<compile_context>
chip_gen: v5e
topology: v5e:2x2
jax: 0.10.0
libtpu: 0.0.40
codegen_flags: <defaults>
</compile_context>

<pallas_src>
import jax
import jax.numpy as jnp
import numpy as np
from jax.experimental import pallas as pl
from jax.experimental.pallas import tpu as pltpu


def _time_embed_kernel(t_ref, f_ref, p_ref, w_ref, b_ref, o_ref):
    # t_ref: [TB, 1], f_ref/p_ref: [1, 2*half], w_ref: [2*half, out], b_ref: [1, out]
    # cos(x) == sin(x + pi/2): one EUP launch builds the full sin|cos activation,
    # no lane-axis concatenate.
    act = jnp.sin(t_ref[...] * f_ref[...] + p_ref[...])              # [TB, 2*half]
    # Single MXU push with K = 2*half.
    y = jnp.dot(act, w_ref[...], preferred_element_type=jnp.float32)  # [TB, out]
    y = y + b_ref[...]                                                # [1, out] broadcast
    # SiLU via tanh: y * sigmoid(y) = 0.5 * y * (tanh(0.5*y) + 1) -> 1 EUP op/elem.
    o_ref[...] = 0.5 * y * (jnp.tanh(0.5 * y) + 1.0)


def time_embedding_forward(time, freqs, weight, bias, *, block_b=1024):
    """time: [B] f32, freqs: [half] f32, weight: [in, out] f32, bias: [out] f32."""
    B = time.shape[0]
    half = freqs.shape[0]
    in_dim, out_dim = weight.shape
    assert in_dim == 2 * half

    # Batch tile: multiple of 8 (sublane rule), capped at block_b. No padding:
    # grid = cdiv(B, tb); the ragged final block (if any) is masked by Pallas.
    tb = min(block_b, ((B + 7) // 8) * 8)
    n_blocks = pl.cdiv(B, tb)

    t2 = time.astype(jnp.float32).reshape(B, 1)
    f_dup = jnp.concatenate([freqs, freqs]).reshape(1, in_dim).astype(jnp.float32)
    phase = jnp.concatenate(
        [jnp.zeros((half,), jnp.float32),
         jnp.full((half,), jnp.pi / 2.0, jnp.float32)]).reshape(1, in_dim)
    # TODO(synk): on v6e/v7x, cast `weight` (and `act`) to bf16 for the MXU while
    # keeping f32 accumulation + f32 EUP math; requires looser test tolerance.
    w = weight.astype(jnp.float32)
    b2 = bias.reshape(1, out_dim).astype(jnp.float32)

    out = pl.pallas_call(
        _time_embed_kernel,
        out_shape=jax.ShapeDtypeStruct((B, out_dim), jnp.float32),
        grid=(n_blocks,),
        in_specs=[
            pl.BlockSpec((tb, 1), lambda i: (i, 0)),            # time tile
            pl.BlockSpec((1, in_dim), lambda i: (0, 0)),        # dup'd freqs (resident)
            pl.BlockSpec((1, in_dim), lambda i: (0, 0)),        # phase table (resident)
            pl.BlockSpec((in_dim, out_dim), lambda i: (0, 0)),  # weight (resident)
            pl.BlockSpec((1, out_dim), lambda i: (0, 0)),       # bias (resident)
        ],
        out_specs=pl.BlockSpec((tb, out_dim), lambda i: (i, 0)),
        compiler_params=pltpu.CompilerParams(
            dimension_semantics=("parallel",)),
    )(t2, f_dup, phase, w, b2)

    return out


def reference_forward(time, freqs, weight, bias):
    emb = time[:, None] * freqs[None, :]
    emb = jnp.concatenate([jnp.sin(emb), jnp.cos(emb)], axis=-1)
    y = emb @ weight + bias
    return y * jax.nn.sigmoid(y)


if __name__ == "__main__":
    in_embed_dim = 32          # -> half_dim = 16
    out_embed_dim = 64
    batch = 8
    theta = 10000.0

    # Deterministic sinusoidal frequency table (matches the PyTorch __init__)
    half_dim = in_embed_dim // 2
    scale = jnp.log(jnp.float32(theta)) / (half_dim - 1)
    freqs = jnp.exp(jnp.arange(half_dim, dtype=jnp.float32) * -scale)

    # Deterministic parameter init (synthetic; not a checkpoint load)
    key = jax.random.PRNGKey(0)
    k_w, k_b, k_t = jax.random.split(key, 3)
    bound = 1.0 / np.sqrt(in_embed_dim)
    # stored as [in, out] so the kernel computes x @ W directly
    weight = jax.random.uniform(k_w, (in_embed_dim, out_embed_dim),
                                jnp.float32, -bound, bound)
    bias = jax.random.uniform(k_b, (out_embed_dim,), jnp.float32, -bound, bound)

    # Example time steps (diffusion-style, up to 1000)
    time = jax.random.uniform(k_t, (batch,), jnp.float32, 0.0, 1000.0)

    out = time_embedding_forward(time, freqs, weight, bias)
    out = jax.block_until_ready(out)

    ref = reference_forward(time, freqs, weight, bias)
    # Tolerance 1e-4: sin(x + pi/2) vs cos(x) differs by the f32 rounding of the
    # phase add at arguments ~1000 (few-e-5 absolute), amplified slightly by the
    # linear layer; well within useful accuracy but above 1e-5.
    np.testing.assert_allclose(np.asarray(out), np.asarray(ref),
                               rtol=1e-4, atol=1e-4)

    print("KERNEL_OK")
</pallas_src>

<mosaic_0001>
module attributes {stable_mosaic.version = 11 : i64} {
  func.func @_time_embed_kernel(%arg0: i32, %arg1: memref<8x1xf32, #tpu.memory_space<vmem>>, %arg2: memref<1x32xf32, #tpu.memory_space<vmem>>, %arg3: memref<1x32xf32, #tpu.memory_space<vmem>>, %arg4: memref<32x64xf32, #tpu.memory_space<vmem>>, %arg5: memref<1x64xf32, #tpu.memory_space<vmem>>, %arg6: memref<8x64xf32, #tpu.memory_space<vmem>>) attributes {dimension_semantics = [#tpu.dimension_semantics<parallel>], iteration_bounds = array<i64: 1>, scalar_prefetch = 0 : i64, scratch_operands = 0 : i64, tpu.core_type = #tpu.core_type<tc>, window_params = [{transform_indices = @transform_0, window_bounds = array<i64: 8, 1>}, {pipeline_mode = #tpu.pipeline_mode<synchronous>, transform_indices = @transform_1, window_bounds = array<i64: 1, 32>}, {pipeline_mode = #tpu.pipeline_mode<synchronous>, transform_indices = @transform_2, window_bounds = array<i64: 1, 32>}, {pipeline_mode = #tpu.pipeline_mode<synchronous>, transform_indices = @transform_3, window_bounds = array<i64: 32, 64>}, {pipeline_mode = #tpu.pipeline_mode<synchronous>, transform_indices = @transform_4, window_bounds = array<i64: 1, 64>}, {transform_indices = @transform_5, window_bounds = array<i64: 8, 64>}]} {
    %c0 = arith.constant 0 : index
    %c0_0 = arith.constant 0 : index
    %0 = vector.load %arg1[%c0, %c0_0] : memref<8x1xf32, #tpu.memory_space<vmem>>, vector<8x1xf32>
    %c0_1 = arith.constant 0 : index
    %c0_2 = arith.constant 0 : index
    %1 = vector.load %arg2[%c0_1, %c0_2] : memref<1x32xf32, #tpu.memory_space<vmem>>, vector<1x32xf32>
    %2 = vector.broadcast %0 : vector<8x1xf32> to vector<8x32xf32>
    %3 = vector.broadcast %1 : vector<1x32xf32> to vector<8x32xf32>
    %4 = arith.mulf %2, %3 : vector<8x32xf32>
    %c0_3 = arith.constant 0 : index
    %c0_4 = arith.constant 0 : index
    %5 = vector.load %arg3[%c0_3, %c0_4] : memref<1x32xf32, #tpu.memory_space<vmem>>, vector<1x32xf32>
    %6 = vector.broadcast %5 : vector<1x32xf32> to vector<8x32xf32>
    %7 = arith.addf %4, %6 : vector<8x32xf32>
    %8 = math.sin %7 : vector<8x32xf32>
    %c0_5 = arith.constant 0 : index
    %c0_6 = arith.constant 0 : index
    %9 = vector.load %arg4[%c0_5, %c0_6] : memref<32x64xf32, #tpu.memory_space<vmem>>, vector<32x64xf32>
    %cst = arith.constant dense<0.000000e+00> : vector<8x64xf32>
    %10 = tpu.matmul %8, %9, %cst {dimension_numbers = #tpu.dot_dimension_numbers<[1], [0], [0], [1], [0, 0, 1, 1], [], []>} : vector<8x32xf32>, vector<32x64xf32>, vector<8x64xf32> -> vector<8x64xf32>
    %c0_7 = arith.constant 0 : index
    %c0_8 = arith.constant 0 : index
    %11 = vector.load %arg5[%c0_7, %c0_8] : memref<1x64xf32, #tpu.memory_space<vmem>>, vector<1x64xf32>
    %12 = vector.broadcast %11 : vector<1x64xf32> to vector<8x64xf32>
    %13 = arith.addf %10, %12 : vector<8x64xf32>
    %cst_9 = arith.constant 5.000000e-01 : f32
    %14 = vector.broadcast %cst_9 : f32 to vector<8x64xf32>
    %15 = arith.mulf %14, %13 : vector<8x64xf32>
    %cst_10 = arith.constant 5.000000e-01 : f32
    %16 = vector.broadcast %cst_10 : f32 to vector<8x64xf32>
    %17 = arith.mulf %16, %13 : vector<8x64xf32>
    %18 = math.tanh %17 : vector<8x64xf32>
    %cst_11 = arith.constant 1.000000e+00 : f32
    %19 = vector.broadcast %cst_11 : f32 to vector<8x64xf32>
    %20 = arith.addf %18, %19 : vector<8x64xf32>
    %21 = arith.mulf %15, %20 : vector<8x64xf32>
    %c0_12 = arith.constant 0 : index
    %c0_13 = arith.constant 0 : index
    %22 = vector.load %arg6[%c0_12, %c0_13] : memref<8x64xf32, #tpu.memory_space<vmem>>, vector<8x64xf32>
    tpu.vector_store %arg6[%c0_12, %c0_13], %21 {strides = array<i32>} : memref<8x64xf32, #tpu.memory_space<vmem>>, vector<8x64xf32>,
    return
  }
  func.func @transform_0(%arg0: i32) -> (i32, i32) {
    %c0_i32 = arith.constant 0 : i32
    %c0_i32_0 = arith.constant 0 : i32
    return %arg0, %c0_i32 : i32, i32
  }
  func.func @transform_1(%arg0: i32) -> (i32, i32) {
    %c0_i32 = arith.constant 0 : i32
    %c0_i32_0 = arith.constant 0 : i32
    %c0_i32_1 = arith.constant 0 : i32
    return %c0_i32, %c0_i32_0 : i32, i32
  }
  func.func @transform_2(%arg0: i32) -> (i32, i32) {
    %c0_i32 = arith.constant 0 : i32
    %c0_i32_0 = arith.constant 0 : i32
    %c0_i32_1 = arith.constant 0 : i32
    return %c0_i32, %c0_i32_0 : i32, i32
  }
  func.func @transform_3(%arg0: i32) -> (i32, i32) {
    %c0_i32 = arith.constant 0 : i32
    %c0_i32_0 = arith.constant 0 : i32
    %c0_i32_1 = arith.constant 0 : i32
    return %c0_i32, %c0_i32_0 : i32, i32
  }
  func.func @transform_4(%arg0: i32) -> (i32, i32) {
    %c0_i32 = arith.constant 0 : i32
    %c0_i32_0 = arith.constant 0 : i32
    %c0_i32_1 = arith.constant 0 : i32
    return %c0_i32, %c0_i32_0 : i32, i32
  }
  func.func @transform_5(%arg0: i32) -> (i32, i32) {
    %c0_i32 = arith.constant 0 : i32
    %c0_i32_0 = arith.constant 0 : i32
    return %arg0, %c0_i32 : i32, i32
  }
}

</mosaic_0001>

<bundles_post_ra>
// kernel: tpu_custom_call.1
= control target key start
LH: loop header
LB: loop body
LE: loop exit
PB: predicated region body
PF: predicated region fallthrough
CT: control target
= control target key end

     0   :  { %10 = vsyncpa [#allocation3], 0  ;;  %s454_s0 = inlined_call_operand.vmem [shape: f32[8,1], index: 0, kind: input, shape index: {}]   ;;  %s455_s1 = inlined_call_operand.vmem [shape: f32[1,32], index: 1, kind: input, shape index: {}]   ;;  %s456_s2 = inlined_call_operand.vmem [shape: f32[1,32], index: 2, kind: input, shape index: {}]   ;;  %s457_s3 = inlined_call_operand.hbm [shape: f32[32,64], index: 3, kind: input, shape index: {}]   ;;  %s458_s4 = inlined_call_operand.vmem [shape: f32[1,64], index: 4, kind: input, shape index: {}]   ;;  %s459_s5 = inlined_call_operand.hbm [shape: f32[8,64], index: 5, kind: output, shape index: {}]  }
   0x1   :  { %11 = vsyncpa [#allocation4], 0  ;;  %s22_s20 = sshll.u32 %s457_s3, 4  ;;  %s336_s21 = smov [#allocation2]   ;;  %s23_s20 = int_to_ptr.hbm [resolvable:$true] %s22_s20 }
   0x2   :  { %s24_s22 = sshll.u32 %s336_s21, 4  ;;  %s337_s23 = smov 128   ;;  %s25_s22 = int_to_ptr.vmem [resolvable:$true] %s24_s22 }
   0x3   :  { %s338_s24 = smov 8  }
   0x4   :  { %30 = dma.hbm_to_vmem [thread:$0]  %s23_s20, 512, %s25_s22, [#allocation3], %s337_s23, %s337_s23, %s338_s24  }
   0x5   :  { %332 = dma.done.wait [#allocation3], 512  }
   0x6   :  { %333 = vsyncadd [#allocation3], 4294966784  ;;  %v339_v0 = vmov 0   ;;  %v37_v1 = vld [vmem:[%s454_s0] sm:$0xff]  ;;  %v211_v2 = vld [vmem:[#allocation2 + $0x18] sm:$0xff]  ;;  %s253_s8 = sshll.u32 %s459_s5, 4  ;;  %s254_s8 = int_to_ptr.hbm [resolvable:$true] %s253_s8 }
   0x7   :  { %278 = vset.pattern.permute.xlu0 %v339_v0  ;;  %v210_v3 = vld [vmem:[#allocation2 + $0x10] sm:$0xff]  ;;  %232 = vmatpush.msra.mxu0 %v211_v2  ;;  %v209_v4 = vld [vmem:[#allocation2 + $0x8] sm:$0xff]  ;;  %v208_v5 = vld [vmem:[#allocation2] sm:$0xff]  ;;  %v340_v22 = vmov 2102212464  }
   0x8   :  { %41 = vperm.xlu0 %278, %v37_v1   ;;  %v279_v6 = vld [vmem:[%s455_s1] ss:$0 sm:$0xff]  ;;  %v341_v24 = vmov 920167782   ;;  %v342_v27 = vmov 1326507024  }
   0x9   :  { %233 = vmatpush.msra.mxu0 %v210_v3  ;;  %v280_v7 = vld [vmem:[%s456_s2] ss:$0 sm:$0xff]  ;;  %v343_v29 = vmov 683565275   ;;  %v344_v31 = vmov 2475754826  }
   0xa   :  { %v345_v34 = vmov 2131351028   ;;  %s346_s2 = smov [#allocation5]  }
   0xb   :  { %234 = vmatpush.msra.mxu0 %v209_v4  ;;  %s251_s30 = sshll.u32 %s346_s2, 4  ;;  %s252_s30 = int_to_ptr.vmem [resolvable:$true] %s251_s30 }
   0xd   :  { %235 = vmatpush.msra.mxu0 %v208_v5 }
  0x7a   :  { %v42_v8 = vpop.permute.xlu0 %41 }
  0x7b   :  { %v47_v9 = vmul.f32 %v279_v6, %v42_v8 }
  0x7d   :  { %v390_v10 = vadd.f32 %v280_v7, %v47_v9 }
  0x7f   :  { %v56_v11 = vand.u32 2139095040, %v390_v10  ;;  %v53_v14 = vand.u32 2147483647, %v390_v10  ;;  %vm55_vm12 = vcmp.lt.s32.totalorder %v390_v10, 0 }
  0x81   :  { %v57_v12 = vshrl.u32 %v56_v11, 23  ;;  %v60_v16 = vand.u32 8388607, %v53_v14  ;;  %vm54_vm13 = vcmp.le.f32.partialorder %v53_v14, 0.7853982 }
  0x83   :  { %v263_v13 = vadd.s32 4294967169, %v57_v12  ;;  %v61_v20 = vor.u32 8388608, %v60_v16 }
  0x85   :  { %v63_v15 = vadd.s32 1, %v263_v13  ;;  %v405_v41 = vshll.u32 %v61_v20, 8 }
  0x87   :  { %vm64_vm0 = vcmp.gt.s32.totalorder %v63_v15, 0  ;;  %v102_v51 = vand.u32 65535, %v405_v41  ;;  %v103_v53 = vshrl.u32 %v405_v41, 16 }
  0x88   :  { %v65_v17 = vsel %vm64_vm0, %v63_v15, 0 }
  0x89   :  { %v67_v18 = vand.u32 31, %v65_v17  ;;  %v398_v21 = vshrl.u32 %v65_v17, 5 }
  0x8b   :  { %v396_v19 = vsub.s32 32, %v67_v18  ;;  %v79_v23 = vshll.u32 %v340_v22, %v67_v18  ;;  %v82_v25 = vshll.u32 %v341_v24, %v67_v18  ;;  %v70_v30 = vshll.u32 %v343_v29, %v67_v18 }
  0x8c   :  { %v73_v33 = vshll.u32 %v344_v31, %v67_v18  ;;  %v76_v36 = vshll.u32 %v345_v34, %v67_v18  ;;  %vm88_vm1 = vcmp.lt.s32.totalorder %v398_v21, 4  ;;  %vm85_vm2 = vcmp.lt.s32.totalorder %v398_v21, 1 }
  0x8d   :  { %v80_v26 = vshrl.u32 %v341_v24, %v396_v19  ;;  %v83_v28 = vshrl.u32 %v342_v27, %v396_v19  ;;  %v71_v32 = vshrl.u32 %v344_v31, %v396_v19  ;;  %v74_v35 = vshrl.u32 %v345_v34, %v396_v19 }
  0x8e   :  { %v77_v37 = vshrl.u32 %v340_v22, %v396_v19  ;;  %vm87_vm3 = vcmp.lt.s32.totalorder %v398_v21, 3  ;;  %vm86_vm4 = vcmp.lt.s32.totalorder %v398_v21, 2  ;;  %v69_v15 = vshrl.u32 %v343_v29, %v396_v19 }
  0x8f   :  { %v81_v38 = vor.u32 %v80_v26, %v79_v23  ;;  %v84_v39 = vor.u32 %v83_v28, %v82_v25  ;;  %v72_v40 = vor.u32 %v71_v32, %v70_v30  ;;  %v75_v42 = vor.u32 %v74_v35, %v73_v33 }
  0x90   :  { %v78_v43 = vor.u32 %v77_v37, %v76_v36 }
  0x91   :  { %v94_v44 = vsel %vm88_vm1, %v81_v38, 920167782  ;;  %v98_v45 = vsel %vm88_vm1, %v84_v39, 1326507024  ;;  %v93_v46 = vsel %vm85_vm2, %v72_v40, %v75_v42  ;;  %v89_v23 = vsel %vm85_vm2, %v69_v15, %v72_v40 }
  0x92   :  { %v95_v47 = vsel %vm87_vm3, %v78_v43, %v94_v44  ;;  %v97_v48 = vsel %vm85_vm2, %v75_v42, %v78_v43  ;;  %v99_v50 = vsel %vm87_vm3, %v81_v38, %v98_v45  ;;  %v90_v11 = vsel %vm88_vm1, %v78_v43, 2102212464 }
  0x93   :  { %v96_v49 = vsel %vm86_vm4, %v93_v46, %v95_v47  ;;  %v100_v52 = vsel %vm86_vm4, %v97_v48, %v99_v50  ;;  %v91_v24 = vsel %vm87_vm3, %v75_v42, %v90_v11  ;;  %vm216_vm1 = vcmask 261120  }
  0x94   :  { %v126_v54 = vand.u32 65535, %v96_v49  ;;  %v127_v55 = vshrl.u32 %v96_v49, 16  ;;  %v104_v56 = vand.u32 65535, %v100_v52  ;;  %v105_v57 = vshrl.u32 %v100_v52, 16 }
  0x95   :  { %v92_v29 = vsel %vm86_vm4, %v89_v23, %v91_v24  ;;  %vm196_vm2 = vweird.f32 %v390_v10  ;;  %vm244_vm3 = vcmask 523264  }
  0x96   :  { %v129_v58 = vmul.u32 %v127_v55, %v102_v51  ;;  %v130_v59 = vmul.u32 %v126_v54, %v103_v53  ;;  %v107_v60 = vmul.u32 %v105_v57, %v102_v51  ;;  %v108_v61 = vmul.u32 %v104_v56, %v103_v53 }
  0x97   :  { %v128_v62 = vmul.u32 %v126_v54, %v102_v51  ;;  %v106_v1 = vmul.u32 %v104_v56, %v102_v51  ;;  %v131_v3 = vmul.u32 %v127_v55, %v103_v53  ;;  %v109_v4 = vmul.u32 %v105_v57, %v103_v53 }
  0x98   :  { %v132_v63 = vshll.u32 %v129_v58, 16  ;;  %v110_v2 = vshll.u32 %v107_v60, 16  ;;  %v134_v5 = vshll.u32 %v130_v59, 16  ;;  %v112_v7 = vshll.u32 %v108_v61, 16 }
  0x99   :  { %v133_v20 = vshrl.u32 %v129_v58, 16  ;;  %v111_v25 = vshrl.u32 %v107_v60, 16  ;;  %v135_v27 = vshrl.u32 %v130_v59, 16  ;;  %v113_v30 = vshrl.u32 %v108_v61, 16 }
  0x9a   :  { %vm136_vm5 = vc.u32 %v128_v62, %v132_v63  ;;  %v138_v6 = vadd.s32 %v132_v63, %v128_v62  ;;  %vm114_vm6 = vc.u32 %v106_v1, %v110_v2  ;;  %v116_v8 = vadd.s32 %v110_v2, %v106_v1 }
  0x9b   :  { %v137_v9 = vsel %vm136_vm5, 1, %v339_v0  ;;  %v115_v12 = vsel %vm114_vm6, 1, %v339_v0  ;;  %v146_v34 = vmul.u32 %v405_v41, %v92_v29 }
  0x9c   :  { %v139_v13 = vadd.s32 %v137_v9, %v131_v3  ;;  %vm140_vm7 = vc.u32 %v138_v6, %v134_v5  ;;  %v117_v16 = vadd.s32 %v115_v12, %v109_v4  ;;  %vm118_vm8 = vc.u32 %v116_v8, %v112_v7 }
  0x9d   :  { %v141_v17 = vsel %vm140_vm7, 1, %v339_v0  ;;  %v119_v18 = vsel %vm118_vm8, 1, %v339_v0  ;;  %v142_v0 = vadd.s32 %v138_v6, %v134_v5 }
  0x9e   :  { %v143_v22 = vadd.s32 %v141_v17, %v139_v13  ;;  %v121_v26 = vadd.s32 %v119_v18, %v117_v16 }
  0xa0   :  { %v144_v28 = vadd.s32 %v143_v22, %v133_v20  ;;  %v122_v19 = vadd.s32 %v121_v26, %v111_v25  ;;  %v281_v25 = vld [vmem:[%s458_s4] ss:$0 sm:$0xff] }
  0xa2   :  { %v145_v31 = vadd.s32 %v144_v28, %v135_v27  ;;  %v123_v32 = vadd.s32 %v122_v19, %v113_v30 }
  0xa4   :  { %v149_v33 = vadd.s32 1, %v145_v31  ;;  %vm148_vm9 = vc.u32 %v123_v32, %v142_v0  ;;  %v147_v46 = vadd.s32 %v142_v0, %v123_v32 }
  0xa6   :  { %v150_v35 = vsel %vm148_vm9, %v149_v33, %v145_v31 }
  0xa7   :  { %v151_v36 = vadd.s32 %v150_v35, %v146_v34 }
  0xa9   :  { %v152_v37 = vadd.s32 536870912, %v151_v36 }
  0xab   :  { %v153_v38 = vshrl.u32 %v152_v37, 30 }
  0xad   :  { %v154_v39 = vshll.u32 %v153_v38, 30  ;;  %v177_v59 = vsub.s32 4, %v153_v38 }
  0xaf   :  { %v155_v40 = vsub.s32 %v151_v36, %v154_v39  ;;  %v178_v1 = vsel %vm55_vm12, %v177_v59, %v153_v38 }
  0xb0   :  { %v180_v4 = vsel %vm54_vm13, 0, %v178_v1 }
  0xb1   :  { %vm156_vm10 = vcmp.lt.s32.totalorder %v155_v40, 0  ;;  %v157_v42 = vsub.s32 0, %v155_v40  ;;  %v197_v9 = vadd.s32 3, %v180_v4 }
  0xb3   :  { %v158_v43 = vsel %vm156_vm10, %v157_v42, %v155_v40  ;;  %v198_v15 = vand.u32 3, %v197_v9 }
  0xb4   :  { %v159_v44 = vclz %v158_v43 }
  0xb5   :  { %vm200_vm14 = vcmp.eq.s32.totalorder %v198_v15, 0  ;;  %vm203_vm15 = vcmp.eq.s32.totalorder %v198_v15, 2  ;;  %vm199_vm0 = vcmp.lt.s32.totalorder %v198_v15, 2 }
  0xb6   :  { %v264_v45 = vadd.s32 4294967294, %v159_v44 }
  0xb8   :  { %vm265_vm11 = vcmp.lt.s32.totalorder %v264_v45, 0 }
  0xb9   :  { %v162_v21 = vsel %vm265_vm11, 0, %v264_v45 }
  0xba   :  { %v163_v47 = vsub.s32 32, %v162_v21  ;;  %v167_v48 = vsub.s32 4294967266, %v162_v21  ;;  %v164_v49 = vshll.u32 %v155_v40, %v162_v21 }
  0xbc   :  { %v165_v50 = vshrl.u32 %v147_v46, %v163_v47  ;;  %v168_v41 = vadd.s32 127, %v167_v48 }
  0xbe   :  { %v166_v51 = vor.u32 %v165_v50, %v164_v49  ;;  %v169_v52 = vshll.u32 %v168_v41, 23 }
  0xc0   :  { %v170_v53 = vor.u32 4788187, %v169_v52  ;;  %v173_v55 = vcvt.s32.f32 %v166_v51 }
  0xc2   :  { %v171_v54 = vand.u32 2147483647, %v170_v53 }
  0xc4   :  { %v174_v56 = vmul.f32 %v173_v55, %v171_v54 }
  0xc6   :  { %v175_v57 = vxor.u32 2147483648, %v174_v56 }
  0xc8   :  { %v176_v58 = vsel %vm55_vm12, %v175_v57, %v174_v56 }
  0xc9   :  { %v179_v60 = vsel %vm54_vm13, %v390_v10, %v176_v58 }
  0xca   :  { %v181_v61 = vmul.f32 %v179_v60, %v179_v60 }
  0xcc   :  { %v182_v62 = vmul.f32 -0.001358992, %v181_v61  ;;  %v189_v63 = vmul.f32 -0.00019511016, %v181_v61 }
  0xce   :  { %v183_v2 = vadd.f32 0.041655596, %v182_v62  ;;  %v190_v3 = vadd.f32 0.008332121, %v189_v63 }
  0xd0   :  { %v184_v5 = vmul.f32 %v183_v2, %v181_v61  ;;  %v191_v6 = vmul.f32 %v190_v3, %v181_v61 }
  0xd2   :  { %v185_v7 = vadd.f32 -0.4999988, %v184_v5  ;;  %v192_v8 = vadd.f32 -0.16666654, %v191_v6 }
  0xd4   :  { %v186_v11 = vmul.f32 %v185_v7, %v181_v61  ;;  %v193_v12 = vmul.f32 %v192_v8, %v181_v61 }
  0xd6   :  { %v187_v13 = vadd.f32 1.0, %v186_v11  ;;  %v194_v14 = vadd.f32 1.0, %v193_v12 }
  0xd8   :  { %v195_v16 = vmul.f32 %v194_v14, %v179_v60  ;;  %v204_v17 = vxor.u32 2147483648, %v187_v13 }
  0xda   :  { %v201_v18 = vxor.u32 2147483648, %v195_v16  ;;  %v205_v22 = vsel %vm203_vm15, %v204_v17, %v195_v16 }
  0xdc   :  { %v202_v20 = vsel %vm200_vm14, %v187_v13, %v201_v18 }
  0xdd   :  { %v206_v23 = vsel %vm199_vm0, %v202_v20, %v205_v22 }
  0xde   :  { %v207_v24 = vsel %vm196_vm2, nan, %v206_v23 }
  0xdf   :  { %266 = vmatmul.msk.f32.vlgmr.msra.gmra.mxu0 %vm216_vm1, %v207_v24 }
 0x15c   :  { %v237_v26 = vpop.f32.mrf.mxu0 }
 0x15d   :  { %v238_v27 = vadd.f32 %v281_v25, %v237_v26 }
 0x15f   :  { %v240_v28 = vmul.f32 0.5, %v238_v27 }
 0x161   :  { %282 = vtanh.f32 %v240_v28 }
 0x167   :  { %v283_v30 = vpop.eup %282 }
 0x168   :  { %v242_v19 = vadd.f32 1.0, %v283_v30 }
 0x16a   :  { %v243_v10 = vmul.f32 %v242_v19, %v240_v28 }
 0x16c   :  { %245 = vst.msk [vmem:[#allocation5] sm:$0xff] %vm244_vm3, %v243_v10 }
 0x16d   :  { %256 = dma.vmem_to_hbm [thread:$0]  %s252_s30, 128, %s254_s8, [#allocation4]  }
 0x16e   :  { %334 = dma.done.wait [#allocation4], 128  }
 0x16f   :  { %335 = vsyncadd [#allocation4], 4294967168 }
 0x170   :  { %261 = vsyncpa [#allocation3], 1 }
 0x171   :  { %262 = vsyncpa [#allocation4], 1 }

</bundles_post_ra>
